<compile_context>
chip_gen: v6e
topology: v6e:2x2x1
jax: 0.10.0
libtpu: 0.0.40
codegen_flags: <defaults>
</compile_context>

<pallas_src>
import functools

import jax
import jax.numpy as jnp
from jax.experimental import pallas as pl
from jax.experimental.pallas import tpu as pltpu


def _round_up(x, m):
    return ((x + m - 1) // m) * m


def _floor_mult(x, m):
    return (x // m) * m


def _vmem_working_set_budget():
    """Per-generation budget (bytes) for the double-buffered working set."""
    cap = None
    try:
        info = pltpu.get_tpu_info()
        cap = getattr(info, "vmem_capacity_bytes", None)
    except Exception:
        cap = None
    if cap is None:
        cap = 64 << 20                    # conservative: v7x per-TensorCore physical VMEM
    # Keep the double-buffered working set well inside VMEM so the compiler keeps
    # 2-deep pipelining and has headroom for f32 temporaries.
    return min(cap // 3, 24 << 20)


def _layernorm_kernel(x_ref, w_ref, *rest, with_bias, eps):
    # x_ref: (nb, C, T)  — C channels in sublanes, T spatial positions in lanes
    # w_ref: (C, 1) f32 (broadcasts over nb and lanes);  b_ref: (C, 1) f32 (WithBias only)
    # o_ref: (nb, C, T)
    o_ref = rest[-1]
    x = x_ref[...].astype(jnp.float32)                     # (nb, C, T)
    w = w_ref[...]                                         # (C, 1), already f32

    mu = jnp.mean(x, axis=1, keepdims=True)                # (nb, 1, T) sublane reduction
    if with_bias:
        # WithBias: two-pass variance (more stable), (x - mu) * rsqrt(var+eps) * w + b
        b = rest[0][...]                                   # (C, 1), already f32
        xc = x - mu
        var = jnp.mean(xc * xc, axis=1, keepdims=True)     # (nb, 1, T)
        inv = jax.lax.rsqrt(var + eps)                     # EUP rsqrt
        y = xc * inv * w + b
    else:
        # BiasFree: output keeps x (no mean subtraction); one-pass var = E[x^2] - mu^2
        var = jnp.mean(x * x, axis=1, keepdims=True) - mu * mu
        inv = jax.lax.rsqrt(var + eps)
        y = x * inv * w
    o_ref[...] = y.astype(o_ref.dtype)


def layernorm_nchw(x, weight, bias=None, *, eps=1e-5, layernorm_type="WithBias"):
    """x: (N, C, H, W); weight/bias: (C,). Returns (N, C, H, W).

    Matches LayerNorm(dim, LayerNorm_type) from the PyTorch spec (normalization over
    the channel dimension per spatial location).
    """
    N, C, H, W = x.shape
    HW = H * W
    itemsize = x.dtype.itemsize
    with_bias = layernorm_type != "BiasFree"
    if with_bias and bias is None:
        raise ValueError("layernorm_type='WithBias' requires a bias vector")

    # ---- budget-aware tile selection -------------------------------------------------
    budget = _vmem_working_set_budget()
    # bytes per lane column, per batch row of one block:
    #   2x(in + out) double-buffered blocks + ~3 f32 temporaries
    per_lane = C * (4 * itemsize + 12)
    t_cap = 2048                                   # v5e/v6e bandwidth plateau, v7x-safe
    T = max(128, min(_floor_mult(budget // per_lane, 128), t_cap))
    T = min(T, _round_up(HW, 128))
    HWp = _round_up(HW, T)                         # lane-dense padding (no masked stores)

    # Fold batches into the block when blocks are small (per-step overhead ~0.35 us),
    # while staying under the VMEM budget.
    blk_bytes = C * T * itemsize
    nb_target = max(1, -(-(512 * 1024) // blk_bytes))       # ceil(512 KiB / block)
    nb_budget = max(1, budget // (per_lane * T))
    nb_cap = min(nb_target, nb_budget, N)
    nb = max(d for d in range(1, N + 1) if N % d == 0 and d <= nb_cap)

    # Keep enough grid steps for v7x's two TensorCores once there is real data to split
    # (no-op on single-TC chips and on tiny inputs).
    total_bytes = N * C * HWp * itemsize
    while (N // nb) * (HWp // T) < 8 and total_bytes > (8 << 20):
        if nb > 1:
            nb = max(d for d in range(1, nb) if N % d == 0)
        elif T > 128:
            T = max(128, _floor_mult(T // 2, 128))
            HWp = _round_up(HW, T)
        else:
            break

    # ---- wrapper-side plumbing (views / lane-dense pad only, no transpose) -----------
    x3 = x.reshape(N, C, HW)
    if HWp != HW:
        x3 = jnp.pad(x3, ((0, 0), (0, 0), (0, HWp - HW)))

    w2 = weight.astype(jnp.float32).reshape(C, 1)
    inputs = [x3, w2]
    in_specs = [
        pl.BlockSpec((nb, C, T), lambda n, t: (n, 0, t)),    # activations
        pl.BlockSpec((C, 1), lambda n, t: (0, 0)),           # weight (VMEM-resident)
    ]
    if with_bias:
        inputs.append(bias.astype(jnp.float32).reshape(C, 1))
        in_specs.append(pl.BlockSpec((C, 1), lambda n, t: (0, 0)))  # bias (resident)

    # Explicit scoped-VMEM limit: 2x(in+out) blocks + ~3 f32 temps + params + slack.
    # (v5e's default scoped limit is only 16 MiB; v7x physical VMEM is 64 MiB.)
    required = 4 * nb * C * T * itemsize + 3 * nb * C * T * 4 + 2 * C * 4 + (2 << 20)
    vmem_limit = int(min(max(required, 16 << 20), 48 << 20))

    kernel = functools.partial(_layernorm_kernel, with_bias=with_bias, eps=eps)

    out3 = pl.pallas_call(
        kernel,
        out_shape=jax.ShapeDtypeStruct((N, C, HWp), x.dtype),
        grid=(N // nb, HWp // T),
        in_specs=in_specs,
        out_specs=pl.BlockSpec((nb, C, T), lambda n, t: (n, 0, t)),
        compiler_params=pltpu.CompilerParams(
            dimension_semantics=("parallel", "parallel"),
            vmem_limit_bytes=vmem_limit,
        ),
    )(*inputs)

    if HWp != HW:
        out3 = out3[:, :, :HW]
    return out3.reshape(N, C, H, W)


def _reference(x, weight, bias, eps, layernorm_type):
    mu = jnp.mean(x, axis=1, keepdims=True)
    var = jnp.mean((x - mu) ** 2, axis=1, keepdims=True)
    w = weight[None, :, None, None]
    if layernorm_type == "BiasFree":
        return x / jnp.sqrt(var + eps) * w
    return (x - mu) / jnp.sqrt(var + eps) * w + bias[None, :, None, None]


if __name__ == "__main__":
    key = jax.random.PRNGKey(0)
    kx, kw, kb, ky = jax.random.split(key, 4)

    # Default module configuration: LayerNorm(dim=48, 'WithBias') on a small NCHW input.
    N, C, H, W = 2, 48, 16, 16
    x = jax.random.normal(kx, (N, C, H, W), dtype=jnp.float32)
    weight = 1.0 + 0.1 * jax.random.normal(kw, (C,), dtype=jnp.float32)
    bias = 0.1 * jax.random.normal(kb, (C,), dtype=jnp.float32)

    out = layernorm_nchw(x, weight, bias, layernorm_type="WithBias")
    out = jax.block_until_ready(out)
    ref = _reference(x, weight, bias, 1e-5, "WithBias")
    assert out.shape == (N, C, H, W)
    assert jnp.allclose(out, ref, atol=1e-4, rtol=1e-4)

    # BiasFree variant (no mean subtraction in the output, no bias).
    out_bf = layernorm_nchw(x, weight, None, layernorm_type="BiasFree")
    out_bf = jax.block_until_ready(out_bf)
    ref_bf = _reference(x, weight, None, 1e-5, "BiasFree")
    assert jnp.allclose(out_bf, ref_bf, atol=1e-4, rtol=1e-4)

    # Non-128-multiple spatial extent exercises the lane-dense padding path.
    N2, C2, H2, W2 = 1, 32, 10, 10
    y = jax.random.normal(ky, (N2, C2, H2, W2), dtype=jnp.float32)
    w2 = jnp.ones((C2,), jnp.float32)
    b2 = jnp.zeros((C2,), jnp.float32)
    out2 = jax.block_until_ready(layernorm_nchw(y, w2, b2, layernorm_type="WithBias"))
    ref2 = _reference(y, w2, b2, 1e-5, "WithBias")
    assert jnp.allclose(out2, ref2, atol=1e-4, rtol=1e-4)

    print("KERNEL_OK")
</pallas_src>

<mosaic_0001>
module attributes {stable_mosaic.version = 11 : i64} {
  func.func @_layernorm_kernel(%arg0: i32, %arg1: i32, %arg2: memref<2x48x256xf32, #tpu.memory_space<vmem>>, %arg3: memref<48x1xf32, #tpu.memory_space<vmem>>, %arg4: memref<48x1xf32, #tpu.memory_space<vmem>>, %arg5: memref<2x48x256xf32, #tpu.memory_space<vmem>>) attributes {dimension_semantics = [#tpu.dimension_semantics<parallel>, #tpu.dimension_semantics<parallel>], iteration_bounds = array<i64: 1, 1>, scalar_prefetch = 0 : i64, scratch_operands = 0 : i64, tpu.core_type = #tpu.core_type<tc>, window_params = [{transform_indices = @transform_0, window_bounds = array<i64: 2, 48, 256>}, {pipeline_mode = #tpu.pipeline_mode<synchronous>, transform_indices = @transform_1, window_bounds = array<i64: 48, 1>}, {pipeline_mode = #tpu.pipeline_mode<synchronous>, transform_indices = @transform_2, window_bounds = array<i64: 48, 1>}, {transform_indices = @transform_3, window_bounds = array<i64: 2, 48, 256>}]} {
    %c0 = arith.constant 0 : index
    %c0_0 = arith.constant 0 : index
    %c0_1 = arith.constant 0 : index
    %0 = vector.load %arg2[%c0, %c0_0, %c0_1] : memref<2x48x256xf32, #tpu.memory_space<vmem>>, vector<2x48x256xf32>
    %c0_2 = arith.constant 0 : index
    %c0_3 = arith.constant 0 : index
    %1 = vector.load %arg3[%c0_2, %c0_3] : memref<48x1xf32, #tpu.memory_space<vmem>>, vector<48x1xf32>
    %cst = arith.constant dense<0.000000e+00> : vector<2x256xf32>
    %2 = vector.multi_reduction <add>, %0, %cst [1] : vector<2x48x256xf32> to vector<2x256xf32>
    %3 = vector.shape_cast %2 : vector<2x256xf32> to vector<2x1x256xf32>
    %cst_4 = arith.constant 4.800000e+01 : f32
    %4 = vector.broadcast %cst_4 : f32 to vector<2x1x256xf32>
    %5 = arith.divf %3, %4 : vector<2x1x256xf32>
    %c0_5 = arith.constant 0 : index
    %c0_6 = arith.constant 0 : index
    %6 = vector.load %arg4[%c0_5, %c0_6] : memref<48x1xf32, #tpu.memory_space<vmem>>, vector<48x1xf32>
    %7 = vector.broadcast %5 : vector<2x1x256xf32> to vector<2x48x256xf32>
    %8 = arith.subf %0, %7 : vector<2x48x256xf32>
    %9 = arith.mulf %8, %8 : vector<2x48x256xf32>
    %cst_7 = arith.constant dense<0.000000e+00> : vector<2x256xf32>
    %10 = vector.multi_reduction <add>, %9, %cst_7 [1] : vector<2x48x256xf32> to vector<2x256xf32>
    %11 = vector.shape_cast %10 : vector<2x256xf32> to vector<2x1x256xf32>
    %cst_8 = arith.constant 4.800000e+01 : f32
    %12 = vector.broadcast %cst_8 : f32 to vector<2x1x256xf32>
    %13 = arith.divf %11, %12 : vector<2x1x256xf32>
    %cst_9 = arith.constant 9.99999974E-6 : f32
    %14 = vector.broadcast %cst_9 : f32 to vector<2x1x256xf32>
    %15 = arith.addf %13, %14 : vector<2x1x256xf32>
    %16 = math.rsqrt %15 : vector<2x1x256xf32>
    %17 = vector.broadcast %16 : vector<2x1x256xf32> to vector<2x48x256xf32>
    %18 = arith.mulf %8, %17 : vector<2x48x256xf32>
    %19 = vector.shape_cast %1 : vector<48x1xf32> to vector<1x48x1xf32>
    %20 = vector.broadcast %19 : vector<1x48x1xf32> to vector<2x48x256xf32>
    %21 = arith.mulf %18, %20 : vector<2x48x256xf32>
    %22 = vector.shape_cast %6 : vector<48x1xf32> to vector<1x48x1xf32>
    %23 = vector.broadcast %22 : vector<1x48x1xf32> to vector<2x48x256xf32>
    %24 = arith.addf %21, %23 : vector<2x48x256xf32>
    %c0_10 = arith.constant 0 : index
    %c0_11 = arith.constant 0 : index
    %c0_12 = arith.constant 0 : index
    %25 = vector.load %arg5[%c0_10, %c0_11, %c0_12] : memref<2x48x256xf32, #tpu.memory_space<vmem>>, vector<2x48x256xf32>
    tpu.vector_store %arg5[%c0_10, %c0_11, %c0_12], %24 {strides = array<i32>} : memref<2x48x256xf32, #tpu.memory_space<vmem>>, vector<2x48x256xf32>,
    return
  }
  func.func @transform_0(%arg0: i32, %arg1: i32) -> (i32, i32, i32) {
    %c0_i32 = arith.constant 0 : i32
    %c0_i32_0 = arith.constant 0 : i32
    return %arg0, %c0_i32, %arg1 : i32, i32, i32
  }
  func.func @transform_1(%arg0: i32, %arg1: i32) -> (i32, i32) {
    %c0_i32 = arith.constant 0 : i32
    %c0_i32_0 = arith.constant 0 : i32
    %c0_i32_1 = arith.constant 0 : i32
    return %c0_i32, %c0_i32_0 : i32, i32
  }
  func.func @transform_2(%arg0: i32, %arg1: i32) -> (i32, i32) {
    %c0_i32 = arith.constant 0 : i32
    %c0_i32_0 = arith.constant 0 : i32
    %c0_i32_1 = arith.constant 0 : i32
    return %c0_i32, %c0_i32_0 : i32, i32
  }
  func.func @transform_3(%arg0: i32, %arg1: i32) -> (i32, i32, i32) {
    %c0_i32 = arith.constant 0 : i32
    %c0_i32_0 = arith.constant 0 : i32
    return %arg0, %c0_i32, %arg1 : i32, i32, i32
  }
}

</mosaic_0001>

<bundles_post_ra>
// kernel: tpu_custom_call.1
= control target key start
LH: loop header
LB: loop body
LE: loop exit
PB: predicated region body
PF: predicated region fallthrough
CT: control target
= control target key end

     0   :  { %8 = vsyncpa [#allocation3], 0  ;;  %s763_s0 = inlined_call_operand.hbm [shape: f32[2,48,256], index: 0, kind: input, shape index: {}]   ;;  %s764_s1 = inlined_call_operand.vmem [shape: f32[48,1], index: 1, kind: input, shape index: {}]   ;;  %s765_s2 = inlined_call_operand.vmem [shape: f32[48,1], index: 2, kind: input, shape index: {}]   ;;  %s766_s3 = inlined_call_operand.hbm [shape: f32[2,48,256], index: 3, kind: output, shape index: {}]  }
   0x1   :  { %9 = vsyncpa [#allocation4], 0  ;;  %s450_s12 = smov [#allocation2]  }
   0x2   :  { %s15_s13 = sshll.u32 %s450_s12, 4  ;;  %s16_s13 = int_to_ptr.vmem [resolvable:$true] %s15_s13 }
   0x3   :  { %s414_s14 = scalar_lea.vmem %s16_s13, 3072  ;;  %p419_p1 = scmp.lt.s32.totalorder %s16_s13, %s16_s13 }
   0x4   :  { %p415_p0 = scmp.ne.s32.totalorder %s16_s13, %s414_s14  ;;  %p420_p2 = scmp.lt.s32.totalorder %s414_s14, %s414_s14 }
   0x6   :  { %p421_p3 = por %p420_p2, %p419_p1 }
   0x8   :  { %p422_p4 = pnand %p421_p3, %p415_p0 }
   0xa   :  { %425 = shalt.err (!%p422_p4)
}
   0xb   :  { %s451_s15 = smov 256   ;;  %s452_s16 = smov 16  }
   0xc   :  { %21 = dma.hbm_to_vmem [thread:$0]  %s763_s0, 3072, %s16_s13, [#allocation3], %s451_s15, %s451_s15, %s452_s16  }
   0xd   :  { %446 = dma.done.wait [#allocation3], 3072  }
   0xe   :  { %447 = vsyncadd [#allocation3], 4294964224  ;;  %v453_v0 = vmov 0   ;;  %v55_v1 = vld [vmem:[%s764_s1 + $0x10] sm:$0xff]  ;;  %v53_v2 = vld [vmem:[%s764_s1] sm:$0xff] }
   0xf   :  { %397 = vset.pattern.permute.xlu1 %v453_v0  ;;  %396 = vset.pattern.permute.xlu0 %v453_v0  ;;  %v56_v3 = vld [vmem:[%s764_s1 + $0x18] sm:$0xff]  ;;  %v54_v4 = vld [vmem:[%s764_s1 + $0x8] sm:$0xff]  ;;  %v493_v5 = vld [vmem:[#allocation2] sm:$0xff] }
  0x10   :  { %254 = vperm.xlu1 %397, %v55_v1   ;;  %244 = vperm.xlu0 %396, %v53_v2   ;;  %v495_v6 = vld [vmem:[#allocation2 + $0x8] sm:$0xff]  ;;  %v497_v7 = vld [vmem:[#allocation2 + $0x10] sm:$0xff]  ;;  %v499_v8 = vld [vmem:[#allocation2 + $0x18] sm:$0xff] }
  0x11   :  { %v59_v9 = vadd.f32 %v497_v7, %v493_v5  ;;  %v58_v10 = vld [vmem:[%s764_s1 + $0x28] sm:$0xff]  ;;  %v57_v11 = vld [vmem:[%s764_s1 + $0x20] sm:$0xff]  ;;  %v70_v13 = vadd.f32 %v499_v8, %v495_v6  ;;  %v519_v17 = vld [vmem:[#allocation2 + $0x70] sm:$0xff] }
  0x12   :  { %v509_v12 = vld [vmem:[#allocation2 + $0x20] sm:$0xff]  ;;  %v513_v14 = vld [vmem:[#allocation2 + $0x28] sm:$0xff]  ;;  %v521_v18 = vld [vmem:[#allocation2 + $0x78] sm:$0xff] }
  0x13   :  { %v515_v15 = vld [vmem:[#allocation2 + $0x60] sm:$0xff]  ;;  %v517_v16 = vld [vmem:[#allocation2 + $0x68] sm:$0xff]  ;;  %v60_v21 = vadd.f32 %v59_v9, %v509_v12  ;;  %v536_v25 = vld [vmem:[#allocation2 + $0x30] sm:$0xff]  ;;  %v71_v26 = vadd.f32 %v70_v13, %v513_v14 }
  0x14   :  { %259 = vperm.xlu1 %397, %v56_v3   ;;  %249 = vperm.xlu0 %396, %v54_v4   ;;  %v523_v19 = vld [vmem:[#allocation2 + $0x80] sm:$0xff]  ;;  %v525_v20 = vld [vmem:[#allocation2 + $0x88] sm:$0xff]  ;;  %v81_v22 = vadd.f32 %v519_v17, %v515_v15  ;;  %v92_v27 = vadd.f32 %v521_v18, %v517_v16  ;;  %v541_v28 = vld [vmem:[#allocation2 + $0x38] sm:$0xff] }
  0x15   :  { %v109_v23 = vld [vmem:[%s765_s2 + $0x8] sm:$0xff]  ;;  %v108_v24 = vld [vmem:[%s765_s2] sm:$0xff]  ;;  %v544_v30 = vld [vmem:[#allocation2 + $0x90] sm:$0xff]  ;;  %v61_v33 = vadd.f32 %v60_v21, %v536_v25  ;;  %v72_v37 = vadd.f32 %v71_v26, %v541_v28 }
  0x16   :  { %v82_v29 = vadd.f32 %v81_v22, %v523_v19  ;;  %v93_v31 = vadd.f32 %v92_v27, %v525_v20  ;;  %v547_v32 = vld [vmem:[#allocation2 + $0x98] sm:$0xff]  ;;  %v110_v35 = vld [vmem:[%s765_s2 + $0x10] sm:$0xff]  ;;  %v556_v36 = vld [vmem:[#allocation2 + $0x40] sm:$0xff] }
  0x17   :  { %v111_v34 = vld [vmem:[%s765_s2 + $0x18] sm:$0xff]  ;;  %v559_v38 = vld [vmem:[#allocation2 + $0x48] sm:$0xff]  ;;  %v562_v40 = vld [vmem:[#allocation2 + $0xa0] sm:$0xff]  ;;  %v62_v43 = vadd.f32 %v61_v33, %v556_v36 }
  0x18   :  { %269 = vperm.xlu1 %397, %v58_v10   ;;  %264 = vperm.xlu0 %396, %v57_v11   ;;  %v83_v39 = vadd.f32 %v82_v29, %v544_v30  ;;  %v94_v41 = vadd.f32 %v93_v31, %v547_v32  ;;  %v565_v42 = vld [vmem:[#allocation2 + $0xa8] sm:$0xff]  ;;  %v112_v45 = vld [vmem:[%s765_s2 + $0x20] sm:$0xff]  ;;  %v574_v46 = vld [vmem:[#allocation2 + $0x50] sm:$0xff]  ;;  %v73_v47 = vadd.f32 %v72_v37, %v559_v38 }
  0x19   :  { %v113_v44 = vld [vmem:[%s765_s2 + $0x28] sm:$0xff]  ;;  %v577_v48 = vld [vmem:[#allocation2 + $0x58] sm:$0xff]  ;;  %v580_v50 = vld [vmem:[#allocation2 + $0xb0] sm:$0xff]  ;;  %v63_v53 = vadd.f32 %v62_v43, %v574_v46  ;;  %s454_s2 = smov [#allocation5]  }
  0x1a   :  { %v84_v49 = vadd.f32 %v83_v39, %v562_v40  ;;  %v95_v51 = vadd.f32 %v94_v41, %v565_v42  ;;  %v583_v52 = vld [vmem:[#allocation2 + $0xb8] sm:$0xff]  ;;  %v74_v54 = vadd.f32 %v73_v47, %v577_v48  ;;  %s379_s14 = sshll.u32 %s454_s2, 4  ;;  %s380_s14 = int_to_ptr.vmem [resolvable:$true] %s379_s14 }
  0x1b   :  { %v64_v57 = vrot.slane %v63_v53, 4  ;;  %s426_s17 = scalar_lea.vmem %s380_s14, 3072  ;;  %p431_p6 = scmp.lt.s32.totalorder %s380_s14, %s380_s14 }
  0x1c   :  { %303 = vperm.xlu1 %397, %v109_v23   ;;  %298 = vperm.xlu0 %396, %v108_v24   ;;  %v85_v55 = vadd.f32 %v84_v49, %v580_v50  ;;  %v96_v56 = vadd.f32 %v95_v51, %v583_v52  ;;  %v75_v58 = vrot.slane %v74_v54, 4  ;;  %p427_p5 = scmp.ne.s32.totalorder %s380_s14, %s426_s17  ;;  %p432_p7 = scmp.lt.s32.totalorder %s426_s17, %s426_s17 }
  0x1d   :  { %v65_v61 = vadd.f32 %v64_v57, %v63_v53 }
  0x1e   :  { %v86_v59 = vrot.slane %v85_v55, 4  ;;  %v97_v60 = vrot.slane %v96_v56, 4  ;;  %v76_v62 = vadd.f32 %v75_v58, %v74_v54  ;;  %p433_p8 = por %p432_p7, %p431_p6 }
  0x1f   :  { %v66_v1 = vrot.slane %v65_v61, 2 }
  0x20   :  { %313 = vperm.xlu1 %397, %v111_v34   ;;  %308 = vperm.xlu0 %396, %v110_v35   ;;  %v87_v63 = vadd.f32 %v86_v59, %v85_v55  ;;  %v98_v0 = vadd.f32 %v97_v60, %v96_v56  ;;  %v77_v2 = vrot.slane %v76_v62, 2  ;;  %p434_p9 = pnand %p433_p8, %p427_p5 }
  0x21   :  { %v67_v9 = vadd.f32 %v66_v1, %v65_v61 }
  0x22   :  { %v88_v3 = vrot.slane %v87_v63, 2  ;;  %v99_v4 = vrot.slane %v98_v0, 2  ;;  %v78_v10 = vadd.f32 %v77_v2, %v76_v62 }
  0x23   :  { %v68_v21 = vrot.slane %v67_v9, 1 }
  0x24   :  { %323 = vperm.xlu1 %397, %v113_v44   ;;  %318 = vperm.xlu0 %396, %v112_v45   ;;  %v89_v11 = vadd.f32 %v88_v3, %v87_v63  ;;  %v100_v13 = vadd.f32 %v99_v4, %v98_v0  ;;  %v79_v22 = vrot.slane %v78_v10, 1 }
  0x25   :  { %v69_v26 = vadd.f32 %v68_v21, %v67_v9 }
  0x26   :  { %v90_v23 = vrot.slane %v89_v11, 1  ;;  %v101_v24 = vrot.slane %v100_v13, 1  ;;  %v80_v27 = vadd.f32 %v79_v22, %v78_v10 }
  0x27   :  { %v104_v33 = vmul.f32 0.020833334, %v69_v26 }
  0x28   :  { %v91_v29 = vadd.f32 %v90_v23, %v89_v11  ;;  %v102_v31 = vadd.f32 %v101_v24, %v100_v13  ;;  %v105_v34 = vmul.f32 0.020833334, %v80_v27 }
  0x29   :  { %v590_v39 = vsub.f32 %v493_v5, %v104_v33  ;;  %v593_v41 = vsub.f32 %v497_v7, %v104_v33  ;;  %v614_v7 = vsub.f32 %v509_v12, %v104_v33  ;;  %v642_v55 = vsub.f32 %v536_v25, %v104_v33 }
  0x2a   :  { %v106_v35 = vmul.f32 0.020833334, %v91_v29  ;;  %v107_v37 = vmul.f32 0.020833334, %v102_v31  ;;  %v596_v43 = vsub.f32 %v495_v6, %v105_v34  ;;  %v599_v44 = vsub.f32 %v499_v8, %v105_v34 }
  0x2b   :  { %v138_v6 = vmul.f32 %v590_v39, %v590_v39  ;;  %v140_v8 = vmul.f32 %v593_v41, %v593_v41  ;;  %v647_v57 = vsub.f32 %v541_v28, %v105_v34  ;;  %v662_v28 = vsub.f32 %v556_v36, %v104_v33 }
  0x2c   :  { %v602_v45 = vsub.f32 %v515_v15, %v106_v35  ;;  %v605_v47 = vsub.f32 %v519_v17, %v106_v35  ;;  %v608_v49 = vsub.f32 %v517_v16, %v107_v37  ;;  %v611_v5 = vsub.f32 %v521_v18, %v107_v37 }
  0x2d   :  { %v621_v15 = vsub.f32 %v513_v14, %v105_v34  ;;  %v139_v17 = vmul.f32 %v596_v43, %v596_v43  ;;  %v141_v16 = vmul.f32 %v599_v44, %v599_v44  ;;  %v628_v18 = vsub.f32 %v523_v19, %v106_v35 }
  0x2e   :  { %v150_v12 = vmul.f32 %v602_v45, %v602_v45  ;;  %v152_v51 = vmul.f32 %v605_v47, %v605_v47  ;;  %v635_v53 = vsub.f32 %v525_v20, %v107_v37  ;;  %v151_v14 = vmul.f32 %v608_v49, %v608_v49 }
  0x2f   :  { %v153_v54 = vmul.f32 %v611_v5, %v611_v5  ;;  %v142_v19 = vmul.f32 %v614_v7, %v614_v7  ;;  %v162_v56 = vadd.f32 %v140_v8, %v138_v6  ;;  %v143_v20 = vmul.f32 %v621_v15, %v621_v15 }
  0x30   :  { %v173_v58 = vadd.f32 %v141_v16, %v139_v17  ;;  %v652_v59 = vsub.f32 %v544_v30, %v106_v35  ;;  %v154_v60 = vmul.f32 %v628_v18, %v628_v18  ;;  %v184_v61 = vadd.f32 %v152_v51, %v150_v12 }
  0x31   :  { %v657_v25 = vsub.f32 %v547_v32, %v107_v37  ;;  %v155_v62 = vmul.f32 %v635_v53, %v635_v53  ;;  %v195_v63 = vadd.f32 %v153_v54, %v151_v14  ;;  %v144_v0 = vmul.f32 %v642_v55, %v642_v55 }
  0x32   :  { %v163_v1 = vadd.f32 %v162_v56, %v142_v19  ;;  %v667_v30 = vsub.f32 %v559_v38, %v105_v34  ;;  %v145_v2 = vmul.f32 %v647_v57, %v647_v57  ;;  %v174_v3 = vadd.f32 %v173_v58, %v143_v20 }
  0x33   :  { %v672_v32 = vsub.f32 %v562_v40, %v106_v35  ;;  %v156_v4 = vmul.f32 %v652_v59, %v652_v59  ;;  %v185_v9 = vadd.f32 %v184_v61, %v154_v60  ;;  %v677_v36 = vsub.f32 %v565_v42, %v107_v37 }
  0x34   :  { %v157_v10 = vmul.f32 %v657_v25, %v657_v25  ;;  %v196_v11 = vadd.f32 %v195_v63, %v155_v62  ;;  %v682_v38 = vsub.f32 %v574_v46, %v104_v33  ;;  %v146_v13 = vmul.f32 %v662_v28, %v662_v28 }
  0x35   :  { %v164_v21 = vadd.f32 %v163_v1, %v144_v0  ;;  %v687_v40 = vsub.f32 %v577_v48, %v105_v34  ;;  %v147_v22 = vmul.f32 %v667_v30, %v667_v30  ;;  %v175_v23 = vadd.f32 %v174_v3, %v145_v2 }
  0x36   :  { %v692_v42 = vsub.f32 %v580_v50, %v106_v35  ;;  %v158_v24 = vmul.f32 %v672_v32, %v672_v32  ;;  %v186_v26 = vadd.f32 %v185_v9, %v156_v4  ;;  %v697_v46 = vsub.f32 %v583_v52, %v107_v37 }
  0x37   :  { %v159_v27 = vmul.f32 %v677_v36, %v677_v36  ;;  %v197_v29 = vadd.f32 %v196_v11, %v157_v10  ;;  %v148_v48 = vmul.f32 %v682_v38, %v682_v38  ;;  %v165_v31 = vadd.f32 %v164_v21, %v146_v13 }
  0x38   :  { %v149_v33 = vmul.f32 %v687_v40, %v687_v40  ;;  %v176_v50 = vadd.f32 %v175_v23, %v147_v22  ;;  %v160_v34 = vmul.f32 %v692_v42, %v692_v42  ;;  %v187_v35 = vadd.f32 %v186_v26, %v158_v24 }
  0x39   :  { %v161_v52 = vmul.f32 %v697_v46, %v697_v46  ;;  %v198_v37 = vadd.f32 %v197_v29, %v159_v27  ;;  %v166_v6 = vadd.f32 %v165_v31, %v148_v48 }
  0x3a   :  { %v177_v8 = vadd.f32 %v176_v50, %v149_v33  ;;  %v188_v17 = vadd.f32 %v187_v35, %v160_v34 }
  0x3b   :  { %v199_v16 = vadd.f32 %v198_v37, %v161_v52  ;;  %v167_v12 = vrot.slane %v166_v6, 4 }
  0x3c   :  { %v178_v51 = vrot.slane %v177_v8, 4  ;;  %v189_v14 = vrot.slane %v188_v17, 4 }
  0x3d   :  { %v200_v54 = vrot.slane %v199_v16, 4  ;;  %v168_v19 = vadd.f32 %v167_v12, %v166_v6 }
  0x3e   :  { %v179_v56 = vadd.f32 %v178_v51, %v177_v8  ;;  %v190_v20 = vadd.f32 %v189_v14, %v188_v17 }
  0x3f   :  { %v201_v58 = vadd.f32 %v200_v54, %v199_v16  ;;  %v169_v60 = vrot.slane %v168_v19, 2 }
  0x40   :  { %v180_v61 = vrot.slane %v179_v56, 2  ;;  %v191_v62 = vrot.slane %v190_v20, 2 }
  0x41   :  { %v202_v63 = vrot.slane %v201_v58, 2  ;;  %v170_v0 = vadd.f32 %v169_v60, %v168_v19 }
  0x42   :  { %v181_v1 = vadd.f32 %v180_v61, %v179_v56  ;;  %v192_v2 = vadd.f32 %v191_v62, %v190_v20 }
  0x43   :  { %v203_v3 = vadd.f32 %v202_v63, %v201_v58  ;;  %v171_v4 = vrot.slane %v170_v0, 1 }
  0x44   :  { %v182_v9 = vrot.slane %v181_v1, 1  ;;  %v193_v10 = vrot.slane %v192_v2, 1 }
  0x45   :  { %v204_v11 = vrot.slane %v203_v3, 1  ;;  %v172_v13 = vadd.f32 %v171_v4, %v170_v0 }
  0x46   :  { %v183_v21 = vadd.f32 %v182_v9, %v181_v1  ;;  %v194_v22 = vadd.f32 %v193_v10, %v192_v2 }
  0x47   :  { %v205_v23 = vadd.f32 %v204_v11, %v203_v3  ;;  %v206_v24 = vmul.f32 0.020833334, %v172_v13 }
  0x48   :  { %v207_v26 = vmul.f32 0.020833334, %v183_v21  ;;  %v208_v27 = vmul.f32 0.020833334, %v194_v22 }
  0x49   :  { %v209_v29 = vmul.f32 0.020833334, %v205_v23  ;;  %v210_v48 = vadd.f32 1e-05, %v206_v24 }
  0x4a   :  { %v211_v31 = vadd.f32 1e-05, %v207_v26  ;;  %v212_v33 = vadd.f32 1e-05, %v208_v27 }
  0x4b   :  { %v213_v50 = vadd.f32 1e-05, %v209_v29  ;;  %398 = vrsqrt.f32 %v210_v48 }
  0x4c   :  { %400 = vrsqrt.f32 %v211_v31 }
  0x4d   :  { %402 = vrsqrt.f32 %v212_v33 }
  0x4e   :  { %404 = vrsqrt.f32 %v213_v50 }
  0x58   :  { %v399_v52 = vpop.eup %398 }
  0x59   :  { %v401_v37 = vpop.eup %400  ;;  %v222_v12 = vmul.f32 %v399_v52, %v614_v7  ;;  %v218_v51 = vmul.f32 %v399_v52, %v590_v39  ;;  %v224_v14 = vmul.f32 %v399_v52, %v642_v55  ;;  %v220_v54 = vmul.f32 %v399_v52, %v593_v41 }
  0x5a   :  { %v403_v6 = vpop.eup %402  ;;  %v223_v19 = vmul.f32 %v401_v37, %v621_v15  ;;  %v219_v56 = vmul.f32 %v401_v37, %v596_v43  ;;  %v225_v20 = vmul.f32 %v401_v37, %v647_v57  ;;  %v221_v58 = vmul.f32 %v401_v37, %v599_v44 }
  0x5b   :  { %v405_v16 = vpop.eup %404  ;;  %v234_v60 = vmul.f32 %v403_v6, %v628_v18  ;;  %v230_v61 = vmul.f32 %v403_v6, %v602_v45  ;;  %v232_v7 = vmul.f32 %v403_v6, %v605_v47  ;;  %v236_v15 = vmul.f32 %v403_v6, %v652_v59 }
  0x5c   :  { %v233_v39 = vmul.f32 %v405_v16, %v611_v5  ;;  %v235_v55 = vmul.f32 %v405_v16, %v635_v53  ;;  %v231_v41 = vmul.f32 %v405_v16, %v608_v49  ;;  %v237_v43 = vmul.f32 %v405_v16, %v657_v25 }
  0x5d   :  { %v228_v44 = vmul.f32 %v399_v52, %v682_v38  ;;  %v229_v18 = vmul.f32 %v401_v37, %v687_v40  ;;  %v240_v45 = vmul.f32 %v403_v6, %v692_v42  ;;  %v241_v47 = vmul.f32 %v405_v16, %v697_v46 }
  0x5e   :  { %v734_v5 = vmul.f32 %v399_v52, %v662_v28  ;;  %v737_v49 = vmul.f32 %v401_v37, %v667_v30  ;;  %v740_v53 = vmul.f32 %v403_v6, %v672_v32  ;;  %v743_v59 = vmul.f32 %v405_v16, %v677_v36 }
  0x8b   :  { %v709_v34 = vpop.permute.xlu1 %254  ;;  %v245_v35 = vpop.permute.xlu0 %244 }
  0x8c   :  { %v272_v0 = vmul.f32 %v245_v35, %v218_v51  ;;  %v273_v42 = vmul.f32 %v245_v35, %v219_v56  ;;  %v284_v1 = vmul.f32 %v245_v35, %v230_v61  ;;  %v285_v46 = vmul.f32 %v245_v35, %v231_v41 }
  0x8d   :  { %v276_v24 = vmul.f32 %v709_v34, %v222_v12  ;;  %v277_v26 = vmul.f32 %v709_v34, %v223_v19  ;;  %v288_v27 = vmul.f32 %v709_v34, %v234_v60  ;;  %v289_v29 = vmul.f32 %v709_v34, %v235_v55 }
  0x8f   :  { %v260_v8 = vpop.permute.xlu1 %259  ;;  %v250_v17 = vpop.permute.xlu0 %249 }
  0x90   :  { %v274_v25 = vmul.f32 %v250_v17, %v220_v54  ;;  %v275_v38 = vmul.f32 %v250_v17, %v221_v58  ;;  %v286_v63 = vmul.f32 %v250_v17, %v232_v7  ;;  %v287_v40 = vmul.f32 %v250_v17, %v233_v39 }
  0x91   :  { %v278_v36 = vmul.f32 %v260_v8, %v224_v14  ;;  %v279_v21 = vmul.f32 %v260_v8, %v225_v20  ;;  %v290_v22 = vmul.f32 %v260_v8, %v236_v15  ;;  %v291_v23 = vmul.f32 %v260_v8, %v237_v43 }
  0x93   :  { %v270_v62 = vpop.permute.xlu1 %269  ;;  %v727_v57 = vpop.permute.xlu0 %264 }
  0x94   :  { %v282_v16 = vmul.f32 %v270_v62, %v228_v44  ;;  %v283_v34 = vmul.f32 %v270_v62, %v229_v18  ;;  %v294_v12 = vmul.f32 %v270_v62, %v240_v45  ;;  %v295_v51 = vmul.f32 %v270_v62, %v241_v47 }
  0x95   :  { %v280_v19 = vmul.f32 %v727_v57, %v734_v5  ;;  %v281_v56 = vmul.f32 %v727_v57, %v737_v49  ;;  %v292_v20 = vmul.f32 %v727_v57, %v740_v53  ;;  %v293_v58 = vmul.f32 %v727_v57, %v743_v59 }
  0x97   :  { %v304_v2 = vpop.permute.xlu1 %303  ;;  %v299_v28 = vpop.permute.xlu0 %298 }
  0x98   :  { %v328_v3 = vadd.f32 %v304_v2, %v274_v25  ;;  %v329_v4 = vadd.f32 %v304_v2, %v275_v38  ;;  %v340_v30 = vadd.f32 %v304_v2, %v286_v63  ;;  %v341_v9 = vadd.f32 %v304_v2, %v287_v40 }
  0x99   :  { %v326_v10 = vadd.f32 %v299_v28, %v272_v0  ;;  %v327_v32 = vadd.f32 %v299_v28, %v273_v42  ;;  %v338_v11 = vadd.f32 %v299_v28, %v284_v1  ;;  %v339_v13 = vadd.f32 %v299_v28, %v285_v46 }
  0x9a   :  { %352 = vst [vmem:[#allocation5 + $0x10] sm:$0xff] %v328_v3  ;;  %353 = vst [vmem:[#allocation5 + $0x18] sm:$0xff] %v329_v4 }
  0x9b   :  { %364 = vst [vmem:[#allocation5 + $0x70] sm:$0xff] %v340_v30  ;;  %365 = vst [vmem:[#allocation5 + $0x78] sm:$0xff] %v341_v9  ;;  %v314_v48 = vpop.permute.xlu1 %313  ;;  %v309_v31 = vpop.permute.xlu0 %308 }
  0x9c   :  { %350 = vst [vmem:[#allocation5] sm:$0xff] %v326_v10  ;;  %351 = vst [vmem:[#allocation5 + $0x8] sm:$0xff] %v327_v32  ;;  %v332_v33 = vadd.f32 %v314_v48, %v278_v36  ;;  %v333_v50 = vadd.f32 %v314_v48, %v279_v21  ;;  %v344_v35 = vadd.f32 %v314_v48, %v290_v22 }
  0x9d   :  { %362 = vst [vmem:[#allocation5 + $0x60] sm:$0xff] %v338_v11  ;;  %363 = vst [vmem:[#allocation5 + $0x68] sm:$0xff] %v339_v13  ;;  %v345_v52 = vadd.f32 %v314_v48, %v291_v23  ;;  %v330_v37 = vadd.f32 %v309_v31, %v276_v24  ;;  %v331_v6 = vadd.f32 %v309_v31, %v277_v26 }
  0x9e   :  { %v342_v8 = vadd.f32 %v309_v31, %v288_v27  ;;  %v343_v17 = vadd.f32 %v309_v31, %v289_v29  ;;  %356 = vst [vmem:[#allocation5 + $0x30] sm:$0xff] %v332_v33  ;;  %357 = vst [vmem:[#allocation5 + $0x38] sm:$0xff] %v333_v50 }
  0x9f   :  { %368 = vst [vmem:[#allocation5 + $0x90] sm:$0xff] %v344_v35  ;;  %369 = vst [vmem:[#allocation5 + $0x98] sm:$0xff] %v345_v52  ;;  %v324_v14 = vpop.permute.xlu1 %323  ;;  %v319_v54 = vpop.permute.xlu0 %318 }
  0xa0   :  { %354 = vst [vmem:[#allocation5 + $0x20] sm:$0xff] %v330_v37  ;;  %355 = vst [vmem:[#allocation5 + $0x28] sm:$0xff] %v331_v6  ;;  %v336_v60 = vadd.f32 %v324_v14, %v282_v16  ;;  %v337_v61 = vadd.f32 %v324_v14, %v283_v34  ;;  %v348_v7 = vadd.f32 %v324_v14, %v294_v12 }
  0xa1   :  { %366 = vst [vmem:[#allocation5 + $0x80] sm:$0xff] %v342_v8  ;;  %367 = vst [vmem:[#allocation5 + $0x88] sm:$0xff] %v343_v17  ;;  %v349_v39 = vadd.f32 %v324_v14, %v295_v51  ;;  %v334_v55 = vadd.f32 %v319_v54, %v280_v19  ;;  %v335_v41 = vadd.f32 %v319_v54, %v281_v56 }
  0xa2   :  { %v346_v15 = vadd.f32 %v319_v54, %v292_v20  ;;  %v347_v43 = vadd.f32 %v319_v54, %v293_v58  ;;  %360 = vst [vmem:[#allocation5 + $0x50] sm:$0xff] %v336_v60  ;;  %361 = vst [vmem:[#allocation5 + $0x58] sm:$0xff] %v337_v61 }
  0xa3   :  { %372 = vst [vmem:[#allocation5 + $0xb0] sm:$0xff] %v348_v7  ;;  %373 = vst [vmem:[#allocation5 + $0xb8] sm:$0xff] %v349_v39 }
  0xa4   :  { %358 = vst [vmem:[#allocation5 + $0x40] sm:$0xff] %v334_v55  ;;  %359 = vst [vmem:[#allocation5 + $0x48] sm:$0xff] %v335_v41 }
  0xa5   :  { %370 = vst [vmem:[#allocation5 + $0xa0] sm:$0xff] %v346_v15  ;;  %371 = vst [vmem:[#allocation5 + $0xa8] sm:$0xff] %v347_v43 }
  0xa6   :  { %437 = shalt.err (!%p434_p9)
}
  0xa7   :  { %385 = dma.vmem_to_hbm [thread:$0]  %s380_s14, 3072, %s766_s3, [#allocation4], %s451_s15, %s451_s15, %s452_s16  }
  0xa8   :  { %448 = dma.done.wait [#allocation4], 3072  }
  0xa9   :  { %449 = vsyncadd [#allocation4], 4294964224 }
  0xaa   :  { %389 = vsyncpa [#allocation3], 1 }
  0xab   :  { %390 = vsyncpa [#allocation4], 1 }

</bundles_post_ra>
